<compile_context>
chip_gen: v6e
topology: v6e:2x2x1
jax: 0.10.0
libtpu: 0.0.40
codegen_flags: <defaults>
</compile_context>

<pallas_src>
import functools

import jax
import jax.numpy as jnp
from jax.experimental import pallas as pl
from jax.experimental.pallas import tpu as pltpu


# ---------------------------------------------------------------------------
# Pallas kernel:  y[:, s] = W2bd @ tanh(W1bd @ x[:, s] + b1) + b2
#   x block : (1, P*C, T)       spatial (T) on lanes, packed channels on sublanes
#   w1bd    : (P*HIDDEN, P*C)   b1: (P*HIDDEN, 1)      (block-diagonal over pack)
#   w2bd    : (P*C, P*HIDDEN)   b2: (P*C, 1)
# ---------------------------------------------------------------------------
def _odefunc_kernel(x_ref, w1_ref, b1_ref, w2_ref, b2_ref, o_ref):
    x = x_ref[0].astype(jnp.float32)                       # (P*C, T)

    # Layer 1 + layer 2 both on the MXU: the VALU slot stays free and the MXU
    # (previously idle) absorbs both contractions, even though they are small.
    h = jnp.dot(w1_ref[...], x, preferred_element_type=jnp.float32) + b1_ref[...]
    h = jnp.tanh(h)                                        # EUP slot
    # TODO(synk): if the bundle dump shows the EUP saturated on v6e/v7x, cast h
    # to bf16 for the tanh (2x EUP rate); on v5e fall back to a VPU rational.

    y = jnp.dot(w2_ref[...], h, preferred_element_type=jnp.float32) + b2_ref[...]
    o_ref[0] = y.astype(o_ref.dtype)                       # lane-dense store


# ---------------------------------------------------------------------------
# Apply path (jitted).  Weights arrive pre-oriented / block-diagonalized.
# ---------------------------------------------------------------------------
@functools.partial(jax.jit, static_argnames=("tile_hw",))
def odefunc_apply(states_nchw, w1bd, b1s, w2bd, b2s, *, tile_hw=8192):
    """states_nchw: (N, C, H, W).  w1bd: (P*HIDDEN, P*C), b1s: (P*HIDDEN, 1),
    w2bd: (P*C, P*HIDDEN), b2s: (P*C, 1).  Returns dy/dt in NCHW layout."""
    N, C, H, W = states_nchw.shape
    HW = H * W
    pc = w1bd.shape[1]                 # pack * C
    ph = w1bd.shape[0]                 # pack * HIDDEN
    pack = pc // C
    NB = N // pack

    # Pure reshape (no copy): consecutive images' channels stack on sublanes.
    x = states_nchw.reshape(NB, pc, HW)

    # Big tiles amortize the ~0.35 us per-grid-step overhead (tile size is the
    # biggest measured lever); but if the batch axis collapses to one block,
    # cap the tile at HW/2 so the grid keeps >= 2 steps for v7x's 2 TensorCores.
    t = min(tile_hw, HW)
    if NB == 1 and HW >= 256:
        t = min(t, HW // 2)
    if t >= 128:
        t = (t // 128) * 128
    grid = (NB, pl.cdiv(HW, t))

    hidden = ph // pack
    cost = pl.CostEstimate(
        flops=4 * C * hidden * N * HW,
        transcendentals=hidden * N * HW,
        bytes_accessed=2 * N * C * HW * 4
        + 4 * (w1bd.size + b1s.size + w2bd.size + b2s.size),
    )

    out = pl.pallas_call(
        _odefunc_kernel,
        out_shape=jax.ShapeDtypeStruct((NB, pc, HW), states_nchw.dtype),
        grid_spec=pl.GridSpec(
            grid=grid,
            in_specs=[
                # Activations: (1, P*C, t) streamed along the lane axis.
                # TODO(synk): on v5e, add pipeline_mode=pl.Buffered(3) here if the
                # bundle still shows exposed DMA after the larger tiles.
                pl.BlockSpec((1, pc, t), lambda n, s: (n, 0, s)),
                # Weights/biases: constant index_maps -> resident in VMEM.
                pl.BlockSpec((ph, pc), lambda n, s: (0, 0)),
                pl.BlockSpec((ph, 1), lambda n, s: (0, 0)),
                pl.BlockSpec((pc, ph), lambda n, s: (0, 0)),
                pl.BlockSpec((pc, 1), lambda n, s: (0, 0)),
            ],
            out_specs=pl.BlockSpec((1, pc, t), lambda n, s: (n, 0, s)),
        ),
        compiler_params=pltpu.CompilerParams(
            dimension_semantics=("parallel", "parallel"),
        ),
        cost_estimate=cost,
    )(x, w1bd, b1s, w2bd, b2s)

    return out.reshape(N, C, H, W)


# ---------------------------------------------------------------------------
# Parameter preparation (done ONCE in __init__, hoisted out of the hot path)
# ---------------------------------------------------------------------------
def _pack_params(w1, b1, w2, b2, pack):
    """w1: (C, HIDDEN), b1: (1, HIDDEN), w2: (HIDDEN, C), b2: (1, C).
    Returns block-diagonal (over `pack` images) transposed weights + biases."""
    C, hidden = w1.shape
    w1t = jnp.transpose(w1)                     # (HIDDEN, C)
    w2t = jnp.transpose(w2)                     # (C, HIDDEN)
    b1c = jnp.reshape(b1, (hidden, 1))
    b2c = jnp.reshape(b2, (C, 1))
    if pack == 1:
        return w1t, b1c, w2t, b2c
    eye = jnp.eye(pack, dtype=w1.dtype)
    w1bd = jnp.einsum("pq,ab->paqb", eye, w1t).reshape(pack * hidden, pack * C)
    w2bd = jnp.einsum("pq,ab->paqb", eye, w2t).reshape(pack * C, pack * hidden)
    b1s = jnp.tile(b1c, (pack, 1))
    b2s = jnp.tile(b2c, (pack, 1))
    return w1bd, b1s, w2bd, b2s


# ---------------------------------------------------------------------------
# ODEfunc wrapper (matches PyTorch module semantics)
# ---------------------------------------------------------------------------
class ODEfuncPallas:
    """Pallas equivalent of ODEfunc: forward(t, states) -> diffeq(states)."""

    def __init__(self, w1, b1, w2, b2):
        C = w1.shape[0]
        # Prepare both the packed (2 images on sublanes) and unpacked variants;
        # the packed one is used whenever the batch is even and 2*C fits 8 sublanes.
        self._params = {1: _pack_params(w1, b1, w2, b2, 1)}
        if 2 * C <= 8:
            self._params[2] = _pack_params(w1, b1, w2, b2, 2)
        # TODO(synk): the torch buffer _num_evals counts device-side evals; this
        # Python counter only counts trace-level calls under jit/odeint.
        self._num_evals = 0.0

    def num_evals(self):
        return self._num_evals

    def __call__(self, t, states):
        del t  # ignored by the reference forward
        self._num_evals += 1.0
        N = states.shape[0]
        pack = 2 if (2 in self._params and N % 2 == 0) else 1
        return odefunc_apply(states, *self._params[pack])


# ---------------------------------------------------------------------------
# Reference (plain JAX) for correctness check
# ---------------------------------------------------------------------------
def _reference(states, w1, b1, w2, b2):
    N, C, H, W = states.shape
    x = jnp.transpose(states, (0, 2, 3, 1)).reshape(-1, C)
    h = jnp.tanh(x @ w1 + b1)
    y = h @ w2 + b2
    return jnp.transpose(y.reshape(N, H, W, C), (0, 3, 1, 2))


if __name__ == "__main__":
    # Small, deterministic example: batch=2, channels=4, spatial=16x16.
    N, C, H, W = 2, 4, 16, 16
    HIDDEN = 32

    key = jax.random.PRNGKey(0)
    k_x, k_w1, k_b1, k_w2, k_b2 = jax.random.split(key, 5)

    states = jax.random.normal(k_x, (N, C, H, W), dtype=jnp.float32)
    w1 = jax.random.normal(k_w1, (C, HIDDEN), dtype=jnp.float32) * 0.1
    b1 = jax.random.normal(k_b1, (1, HIDDEN), dtype=jnp.float32) * 0.1
    w2 = jax.random.normal(k_w2, (HIDDEN, C), dtype=jnp.float32) * 0.1
    b2 = jax.random.normal(k_b2, (1, C), dtype=jnp.float32) * 0.1

    ode_func = ODEfuncPallas(w1, b1, w2, b2)

    t = jnp.array(0.0, dtype=jnp.float32)   # ignored, like the torch module
    dy_dt = ode_func(t, states)
    dy_dt = jax.block_until_ready(dy_dt)

    ref = _reference(states, w1, b1, w2, b2)
    assert dy_dt.shape == states.shape and dy_dt.dtype == states.dtype
    assert jnp.allclose(dy_dt, ref, atol=1e-5, rtol=1e-5)

    print("KERNEL_OK")
</pallas_src>

<mosaic_0001>
module attributes {stable_mosaic.version = 11 : i64} {
  func.func @_odefunc_kernel(%arg0: i32, %arg1: i32, %arg2: memref<1x8x128xf32, #tpu.memory_space<vmem>>, %arg3: memref<64x8xf32, #tpu.memory_space<vmem>>, %arg4: memref<64x1xf32, #tpu.memory_space<vmem>>, %arg5: memref<8x64xf32, #tpu.memory_space<vmem>>, %arg6: memref<8x1xf32, #tpu.memory_space<vmem>>, %arg7: memref<1x8x128xf32, #tpu.memory_space<vmem>>) attributes {dimension_semantics = [#tpu.dimension_semantics<parallel>, #tpu.dimension_semantics<parallel>], iteration_bounds = array<i64: 1, 2>, scalar_prefetch = 0 : i64, scratch_operands = 0 : i64, tpu.core_type = #tpu.core_type<tc>, window_params = [{transform_indices = @transform_0, window_bounds = array<i64: 1, 8, 128>}, {pipeline_mode = #tpu.pipeline_mode<synchronous>, transform_indices = @transform_1, window_bounds = array<i64: 64, 8>}, {pipeline_mode = #tpu.pipeline_mode<synchronous>, transform_indices = @transform_2, window_bounds = array<i64: 64, 1>}, {pipeline_mode = #tpu.pipeline_mode<synchronous>, transform_indices = @transform_3, window_bounds = array<i64: 8, 64>}, {pipeline_mode = #tpu.pipeline_mode<synchronous>, transform_indices = @transform_4, window_bounds = array<i64: 8, 1>}, {transform_indices = @transform_5, window_bounds = array<i64: 1, 8, 128>}]} {
    %c0 = arith.constant 0 : index
    %c0_0 = arith.constant 0 : index
    %c0_1 = arith.constant 0 : index
    %0 = vector.load %arg2[%c0, %c0_0, %c0_1] : memref<1x8x128xf32, #tpu.memory_space<vmem>>, vector<1x8x128xf32>
    %1 = vector.shape_cast %0 : vector<1x8x128xf32> to vector<8x128xf32>
    %c0_2 = arith.constant 0 : index
    %c0_3 = arith.constant 0 : index
    %2 = vector.load %arg3[%c0_2, %c0_3] : memref<64x8xf32, #tpu.memory_space<vmem>>, vector<64x8xf32>
    %cst = arith.constant dense<0.000000e+00> : vector<64x128xf32>
    %3 = tpu.matmul %2, %1, %cst {dimension_numbers = #tpu.dot_dimension_numbers<[1], [0], [0], [1], [0, 0, 1, 1], [], []>} : vector<64x8xf32>, vector<8x128xf32>, vector<64x128xf32> -> vector<64x128xf32>
    %c0_4 = arith.constant 0 : index
    %c0_5 = arith.constant 0 : index
    %4 = vector.load %arg4[%c0_4, %c0_5] : memref<64x1xf32, #tpu.memory_space<vmem>>, vector<64x1xf32>
    %5 = vector.broadcast %4 : vector<64x1xf32> to vector<64x128xf32>
    %6 = arith.addf %3, %5 : vector<64x128xf32>
    %7 = math.tanh %6 : vector<64x128xf32>
    %c0_6 = arith.constant 0 : index
    %c0_7 = arith.constant 0 : index
    %8 = vector.load %arg5[%c0_6, %c0_7] : memref<8x64xf32, #tpu.memory_space<vmem>>, vector<8x64xf32>
    %cst_8 = arith.constant dense<0.000000e+00> : vector<8x128xf32>
    %9 = tpu.matmul %8, %7, %cst_8 {dimension_numbers = #tpu.dot_dimension_numbers<[1], [0], [0], [1], [0, 0, 1, 1], [], []>} : vector<8x64xf32>, vector<64x128xf32>, vector<8x128xf32> -> vector<8x128xf32>
    %c0_9 = arith.constant 0 : index
    %c0_10 = arith.constant 0 : index
    %10 = vector.load %arg6[%c0_9, %c0_10] : memref<8x1xf32, #tpu.memory_space<vmem>>, vector<8x1xf32>
    %11 = vector.broadcast %10 : vector<8x1xf32> to vector<8x128xf32>
    %12 = arith.addf %9, %11 : vector<8x128xf32>
    %c0_11 = arith.constant 0 : index
    %c0_12 = arith.constant 0 : index
    %c0_13 = arith.constant 0 : index
    %13 = vector.load %arg7[%c0_11, %c0_12, %c0_13] : memref<1x8x128xf32, #tpu.memory_space<vmem>>, vector<1x8x128xf32>
    %14 = vector.shape_cast %13 : vector<1x8x128xf32> to vector<8x128xf32>
    %15 = vector.shape_cast %12 : vector<8x128xf32> to vector<1x8x128xf32>
    tpu.vector_store %arg7[%c0_11, %c0_12, %c0_13], %15 {strides = array<i32>} : memref<1x8x128xf32, #tpu.memory_space<vmem>>, vector<1x8x128xf32>,
    return
  }
  func.func @transform_0(%arg0: i32, %arg1: i32) -> (i32, i32, i32) {
    %c0_i32 = arith.constant 0 : i32
    %c0_i32_0 = arith.constant 0 : i32
    return %arg0, %c0_i32, %arg1 : i32, i32, i32
  }
  func.func @transform_1(%arg0: i32, %arg1: i32) -> (i32, i32) {
    %c0_i32 = arith.constant 0 : i32
    %c0_i32_0 = arith.constant 0 : i32
    %c0_i32_1 = arith.constant 0 : i32
    return %c0_i32, %c0_i32_0 : i32, i32
  }
  func.func @transform_2(%arg0: i32, %arg1: i32) -> (i32, i32) {
    %c0_i32 = arith.constant 0 : i32
    %c0_i32_0 = arith.constant 0 : i32
    %c0_i32_1 = arith.constant 0 : i32
    return %c0_i32, %c0_i32_0 : i32, i32
  }
  func.func @transform_3(%arg0: i32, %arg1: i32) -> (i32, i32) {
    %c0_i32 = arith.constant 0 : i32
    %c0_i32_0 = arith.constant 0 : i32
    %c0_i32_1 = arith.constant 0 : i32
    return %c0_i32, %c0_i32_0 : i32, i32
  }
  func.func @transform_4(%arg0: i32, %arg1: i32) -> (i32, i32) {
    %c0_i32 = arith.constant 0 : i32
    %c0_i32_0 = arith.constant 0 : i32
    %c0_i32_1 = arith.constant 0 : i32
    return %c0_i32, %c0_i32_0 : i32, i32
  }
  func.func @transform_5(%arg0: i32, %arg1: i32) -> (i32, i32, i32) {
    %c0_i32 = arith.constant 0 : i32
    %c0_i32_0 = arith.constant 0 : i32
    return %arg0, %c0_i32, %arg1 : i32, i32, i32
  }
}

</mosaic_0001>

<bundles_post_ra>
// kernel: odefunc_apply.1
= control target key start
LH: loop header
LB: loop body
LE: loop exit
PB: predicated region body
PF: predicated region fallthrough
CT: control target
= control target key end

     0   :  { %s787_s18 = smov 0   ;;  %s789_s19 = smov 0   ;;  %s889_s0 = inlined_call_operand.vmem [shape: f32[1,8,256], index: 0, kind: input, shape index: {}]   ;;  %s890_s1 = inlined_call_operand.vmem [shape: f32[64,8], index: 1, kind: input, shape index: {}]   ;;  %s891_s2 = inlined_call_operand.vmem [shape: f32[64,1], index: 2, kind: input, shape index: {}]   ;;  %s892_s3 = inlined_call_operand.vmem [shape: f32[8,64], index: 3, kind: input, shape index: {}]   ;;  %s893_s4 = inlined_call_operand.vmem [shape: f32[8,1], index: 4, kind: input, shape index: {}]   ;;  %s894_s5 = inlined_call_operand.vmem [shape: f32[1,8,256], index: 5, kind: output, shape index: {}]  }
   0x1   :  { %s791_s20 = smov 0  }
   0x2 LB: > { %s24_s21 = sadd.s32 1, %s748_s19  ;;  %p620_p0 = scmp.ge.s32.totalorder %s752_s20, 1  ;;  %s752_s20 = sphi %s791_s20, %s15_s20   ;;  %s748_s19 = sphi %s789_s19, %s896_s19   ;;  %s744_s18 = sphi %s787_s18, %s895_s18  }
   0x3   : > { %p25_p1 = scmp.ge.s32.totalorder %s24_s21, 2  ;;  %p206_p2 = scmp.lt.s32.totalorder %s752_s20, 3 }
   0x5   : > { %s898_s21 = smov (%p25_p1, %s24_s21), 0  ;;  %p207_p3 = pnand %p620_p0, %p206_p2 }
   0x6   : > { %p242_p4 = scmp.lt.s32.totalorder (!%p207_p3), %s744_s18, 1 }
   0x7   : > { %210 = sbr.rel (%p207_p3) target bundleno = 450 (0x1c2), region = 40 }
   0xc   : > { %v257_v0 = vld [vmem:[%s890_s1] sm:$0xff]  ;;  %vm313_vm0 = vcmask 64512   ;;  %v754_v1 = vmov 0   ;;  %s900_s18 = smov (!%p242_p4, %s744_s18), 1  ;;  %v272_v2 = vld [vmem:[%s891_s2 + $0x38] sm:$0xff]  ;;  %v270_v3 = vld [vmem:[%s891_s2 + $0x28] sm:$0xff] }
   0xd   : > { %654 = vmatprep.mubr.msk.f32.mxu0 %vm313_vm0, %v257_v0  ;;  %712 = vset.pattern.permute.xlu0 %v754_v1  ;;  %s621_s28 = sshll.u32 %s900_s18, 3  ;;  %v271_v4 = vld [vmem:[%s891_s2 + $0x30] sm:$0xff]  ;;  %v269_v5 = vld [vmem:[%s891_s2 + $0x20] sm:$0xff]  ;;  %v258_v7 = vld [vmem:[%s890_s1 + $0x8] sm:$0xff]  ;;  %v755_v19 = vmov 0.0   ;;  %vm756_vm1 = vmmov 0  }
   0xe   : > { %713 = vset.pattern.permute.xlu1 %v754_v1  ;;  %310 = vperm.xlu0 %712, %v272_v2   ;;  %s247_s8 = scalar_lea.vmem %s889_s0, %s621_s28  ;;  %v259_v8 = vld [vmem:[%s890_s1 + $0x10] sm:$0xff]  ;;  %v268_v9 = vld [vmem:[%s891_s2 + $0x18] sm:$0xff]  ;;  %v261_v12 = vld [vmem:[%s890_s1 + $0x20] sm:$0xff]  ;;  %vm458_vm2 = vcmask 523264   ;;  %s255_s23 = scalar_lea.vmem %s894_s5, %s621_s28 }
   0xf   : > { %300 = vperm.xlu1 %713, %v270_v3   ;;  %v256_v6 = vld [vmem:[%s247_s8] sm:$0xff]  ;;  %v267_v10 = vld [vmem:[%s891_s2 + $0x10] sm:$0xff]  ;;  %v260_v11 = vld [vmem:[%s890_s1 + $0x18] sm:$0xff]  ;;  %666 = vmatprep.subr.mxu1 %v755_v19 }
  0x10   : > { %652 = vmatprep.subr.mxu0 %v256_v6  ;;  %v266_v13 = vld [vmem:[%s891_s2 + $0x8] sm:$0xff]  ;;  %v265_v14 = vld [vmem:[%s891_s2] sm:$0xff]  ;;  %v263_v16 = vld [vmem:[%s890_s1 + $0x30] sm:$0xff]  ;;  %682 = vmatprep.mubr.msk.f32.mxu1 %vm756_vm1, %v755_v19 }
  0x11   : > { %653 = vmatpush3.msra.mxu0 %v256_v6  ;;  %v262_v15 = vld [vmem:[%s890_s1 + $0x28] sm:$0xff]  ;;  %v452_v17 = vld [vmem:[%s893_s4] sm:$0xff]  ;;  %v264_v18 = vld [vmem:[%s890_s1 + $0x38] sm:$0xff] }
  0x12   : > { %305 = vperm.xlu0 %712, %v271_v4   ;;  %655 = vmatmul.mubr.msk.f32.vlgmr.msra.gmra.mxu0 %vm313_vm0, %v258_v7  ;;  %v451_v51 = vld [vmem:[%s892_s3] sm:$0xff] }
  0x13   : > { %295 = vperm.xlu1 %713, %v269_v5   ;;  %657 = vmatprep.mubr.msk.f32.mxu0 %vm313_vm0, %v259_v8 }
  0x16   : > { %290 = vperm.xlu0 %712, %v268_v9   ;;  %658 = vmatmul.mubr.msk.f32.gmra.mxu0 %vm313_vm0, %v260_v11 }
  0x17   : > { %285 = vperm.xlu1 %713, %v267_v10   ;;  %660 = vmatprep.mubr.msk.f32.mxu0 %vm313_vm0, %v261_v12 }
  0x1a   : > { %280 = vperm.xlu0 %712, %v266_v13   ;;  %661 = vmatmul.mubr.msk.f32.gmra.mxu0 %vm313_vm0, %v262_v15 }
  0x1b   : > { %275 = vperm.xlu1 %713, %v265_v14   ;;  %663 = vmatprep.mubr.msk.f32.mxu0 %vm313_vm0, %v263_v16 }
  0x1e   : > { %455 = vperm.xlu0 %712, %v452_v17   ;;  %664 = vmatmul.mubr.msk.f32.gmra.mxu0 %vm313_vm0, %v264_v18 }
  0x89   : > { %v311_v21 = vpop.permute.xlu0 %310 }
  0x8a   : > { %v301_v23 = vpop.permute.xlu1 %300 }
  0x8d   : > { %v306_v26 = vpop.permute.xlu0 %305 }
  0x8e   : > { %v296_v28 = vpop.permute.xlu1 %295 }
  0x91   : > { %v291_v32 = vpop.permute.xlu0 %290 }
  0x92   : > { %v286_v36 = vpop.permute.xlu1 %285 }
  0x95   : > { %v281_v39 = vpop.permute.xlu0 %280 }
  0x96   : > { %v276_v41 = vpop.permute.xlu1 %275 }
  0x99   : > { %v456_v53 = vpop.permute.xlu0 %455 }
  0xd2   : > { %v656_v20 = vpop.f32.mrf.mxu0 }
  0xd3   : > { %v410_v42 = vadd.f32 %v656_v20, %v281_v39 }
  0xd4   : > { %v404_v22 = vpop.f32.mrf.mxu0 }
  0xd5   : > { %v405_v43 = vadd.f32 %v404_v22, %v276_v41 }
  0xd6   : > { %v659_v24 = vpop.f32.mrf.mxu0 }
  0xd7   : > { %v420_v38 = vadd.f32 %v659_v24, %v291_v32 }
  0xd8   : > { %v414_v25 = vpop.f32.mrf.mxu0 }
  0xd9   : > { %v415_v40 = vadd.f32 %v414_v25, %v286_v36 }
  0xda   : > { %v662_v27 = vpop.f32.mrf.mxu0 }
  0xdb   : > { %v430_v34 = vadd.f32 %v662_v27, %v301_v23 }
  0xdc   : > { %v424_v29 = vpop.f32.mrf.mxu0 }
  0xdd   : > { %v425_v37 = vadd.f32 %v424_v29, %v296_v28 }
  0xde   : > { %v665_v30 = vpop.f32.mrf.mxu0 }
  0xdf   : > { %v440_v31 = vadd.f32 %v665_v30, %v311_v21 }
  0xe0   : > { %v434_v33 = vpop.f32.mrf.mxu0 }
  0xe1   : > { %714 = vtanh.f32 %v440_v31  ;;  %v435_v35 = vadd.f32 %v434_v33, %v306_v26 }
  0xe3   : > { %716 = vtanh.f32 %v435_v35 }
  0xe4   : > { %718 = vtanh.f32 %v430_v34 }
  0xe5   : > { %720 = vtanh.f32 %v425_v37 }
  0xe6   : > { %722 = vtanh.f32 %v420_v38 }
  0xe7   : > { %724 = vtanh.f32 %v415_v40 }
  0xe8   : > { %726 = vtanh.f32 %v410_v42 }
  0xe9   : > { %728 = vtanh.f32 %v405_v43 }
  0xee   : > { %v715_v44 = vpop.eup %714 }
  0xef   : > { %667 = vmatpush3.msra.mxu1 %v715_v44 }
  0xf0   : > { %v717_v45 = vpop.eup %716  ;;  %668 = vmatprep.subr.mxu1 %v755_v19 }
  0xf1   : > { %669 = vmatpush3.msra.mxu1 %v717_v45  ;;  %v719_v46 = vpop.eup %718 }
  0xf2   : > { %670 = vmatprep.subr.mxu1 %v755_v19  ;;  %v721_v47 = vpop.eup %720 }
  0xf3   : > { %671 = vmatpush3.msra.mxu1 %v719_v46  ;;  %v723_v48 = vpop.eup %722 }
  0xf4   : > { %672 = vmatprep.subr.mxu1 %v755_v19  ;;  %v725_v49 = vpop.eup %724 }
  0xf5   : > { %673 = vmatpush3.msra.mxu1 %v721_v47  ;;  %v727_v50 = vpop.eup %726 }
  0xf6   : > { %674 = vmatprep.subr.mxu1 %v755_v19  ;;  %v729_v52 = vpop.eup %728 }
  0xf7   : > { %675 = vmatpush3.msra.mxu1 %v723_v48 }
  0xf8   : > { %676 = vmatprep.subr.mxu1 %v755_v19 }
  0xf9   : > { %677 = vmatpush3.msra.mxu1 %v725_v49 }
  0xfa   : > { %678 = vmatprep.subr.mxu1 %v755_v19 }
  0xfb   : > { %679 = vmatpush3.msra.mxu1 %v727_v50 }
  0xfc   : > { %680 = vmatprep.subr.mxu1 %v755_v19 }
  0xfd   : > { %681 = vmatpush3.msra.mxu1 %v729_v52 }
  0xfe   : > { %683 = vmatmul.mubr.msk.f32.vlgmr.msra.gmra.mxu1 %vm458_vm2, %v451_v51 }
 0x1be   : > { %v528_v54 = vpop.f32.mrf.mxu1 }
 0x1bf   : > { %v529_v55 = vadd.f32 %v528_v54, %v456_v53 }
 0x1c0   : > { %v684_v56 = vpop.f32.mrf.mxu1 }
 0x1c1   : > { %532 = vst [vmem:[%s255_s23] sm:$0xff] %v529_v55 }
 0x1c2 PF: > { %s15_s20 = sadd.s32 1, %s752_s20   ;;  %s895_s18 = smov %s748_s19 }
 0x1c3   : > { %p12_p5 = scmp.ge.s32.totalorder %s15_s20, 4   ;;  %s896_s19 = smov %s898_s21 }
 0x1c5   :  { %14 = sbr.rel (!%p12_p5) target bundleno = 2 (0x2), region = 70 }

</bundles_post_ra>
